<compile_context>
chip_gen: v7x
topology: tpu7x:2x2x1
jax: 0.10.0
libtpu: 0.0.40
codegen_flags: <defaults>
</compile_context>

<pallas_src>
import jax
import jax.numpy as jnp
from jax.experimental import pallas as pl
from jax.experimental.pallas import tpu as pltpu

_TILE_BUDGET_BYTES = 4 * 1024 * 1024   # per-tile byte budget (per array)
_VMEM_LIMIT_BYTES = 48 * 1024 * 1024   # scoped-VMEM override, safe on v5e/v6e/v7x


def _make_kernel(compute_dtype):
    def kernel(w_ref, b_ref, x_ref, o_ref):
        # w_ref, b_ref: (1, 1) f32 scalars in SMEM; x_ref / o_ref: VMEM tiles.
        w = w_ref[0, 0].astype(compute_dtype)
        b = b_ref[0, 0].astype(compute_dtype)
        y = x_ref[...].astype(compute_dtype) * w + b
        o_ref[...] = y.astype(o_ref.dtype)
    return kernel


def _as_lane_dense_2d(x):
    """Present x as 2-D with a last dim that is a large multiple of 128.

    Returns (x2d, valid_count); valid_count is None unless the array had to be
    padded (pathological 1-D sizes), in which case the caller keeps only the
    first `valid_count` elements of the flattened result.
    """
    t = x.size
    for n in (8192, 4096, 2048, 1024, 512, 384, 256, 128):
        if t % n == 0:
            return x.reshape(t // n, n), None
    # No >=128 divisor: keep the trailing dim (Pallas masks partial lanes).
    if x.ndim >= 2 and x.shape[-1] >= 8:
        return x.reshape(-1, x.shape[-1]), None
    # Last resort (awkward 1-D sizes): materialize a lane-dense padded view.
    # TODO(synk): replace with an in-kernel masked tail block to avoid the
    # extra HBM traffic of a materialized pad.
    rows = -(-t // 128)
    x_pad = jnp.pad(x.reshape(-1), (0, rows * 128 - t)).reshape(rows, 128)
    return x_pad, t


def _pick_row_tile(m, budget_rows):
    """Largest multiple-of-8 row tile under budget; prefer exact divisors of m."""
    budget_rows = min(m, budget_rows)
    if budget_rows >= m:
        return m
    budget_rows = max(8, (budget_rows // 8) * 8)
    target_steps = -(-m // budget_rows)
    for tm in range(budget_rows, 7, -8):
        if m % tm == 0:
            # Take the divisor only if it does not add grid steps.
            return tm if (m // tm) <= target_steps else budget_rows
    return budget_rows


def _pick_tiles(m, n, itemsize):
    """Pick (tm, tn): lane-dense, (8,128)-aligned (or full-dim), filling the budget."""
    budget = _TILE_BUDGET_BYTES
    if m * n * itemsize <= budget:
        return m, n                                   # whole array, single block
    row_bytes = n * itemsize
    if 8 * row_bytes <= budget:
        return _pick_row_tile(m, budget // row_bytes), n   # full-N row slabs
    # N itself is huge: tile the lane dim with a large multiple of 128.
    tn = min(n, max(128, (budget // (8 * itemsize)) // 128 * 128))
    tm = min(m, max(8, (budget // (tn * itemsize)) // 8 * 8))
    return tm, tn


def linear_regression_forward(x, weights, bias):
    """y = weights * x + bias (elementwise), computed in a Pallas TPU kernel."""
    orig_shape = x.shape
    x2, valid = _as_lane_dense_2d(x)
    m, n = x2.shape
    tm, tn = _pick_tiles(m, n, x2.dtype.itemsize)

    # bf16/f16: native-dtype math (v6e/v7x bf16 VALU; kernel is DMA-bound
    # regardless).  Other inputs compute in f32 then cast to the output dtype.
    if x2.dtype in (jnp.bfloat16, jnp.float16):
        compute_dtype = x2.dtype
    else:
        compute_dtype = jnp.float32

    w2d = jnp.reshape(weights, (1, 1)).astype(jnp.float32)
    b2d = jnp.reshape(bias, (1, 1)).astype(jnp.float32)

    gm = pl.cdiv(m, tm)
    gn = pl.cdiv(n, tn)

    smem_spec = pl.BlockSpec(memory_space=pltpu.MemorySpace.SMEM)
    if gn == 1:
        grid = (gm,)
        data_spec = pl.BlockSpec((tm, tn), lambda i: (i, 0))
    else:
        grid = (gm, gn)
        data_spec = pl.BlockSpec((tm, tn), lambda i, j: (i, j))

    cost = pl.CostEstimate(
        flops=2 * x2.size,
        transcendentals=0,
        bytes_accessed=2 * x2.size * x2.dtype.itemsize,
    )

    def run(semantics):
        return pl.pallas_call(
            _make_kernel(compute_dtype),
            out_shape=jax.ShapeDtypeStruct((m, n), x2.dtype),
            grid=grid,
            in_specs=[smem_spec, smem_spec, data_spec],
            out_specs=data_spec,
            compiler_params=pltpu.CompilerParams(
                dimension_semantics=semantics,
                vmem_limit_bytes=_VMEM_LIMIT_BYTES,
            ),
            cost_estimate=cost,
        )(w2d, b2d, x2)

    # Prefer CORE_PARALLEL on the leading axis so v7x streams on both
    # TensorCores; fall back to plain PARALLEL if this stack rejects it.
    try:
        y2 = run((pltpu.CORE_PARALLEL,) + (pltpu.PARALLEL,) * (len(grid) - 1))
    except Exception:  # pragma: no cover - depends on jax/libtpu version
        y2 = run((pltpu.PARALLEL,) * len(grid))

    if valid is not None:
        return y2.reshape(-1)[:valid].reshape(orig_shape)
    return y2.reshape(orig_shape)


if __name__ == "__main__":
    key = jax.random.PRNGKey(0)
    kw, kb, kx = jax.random.split(key, 3)

    # Deterministic "parameters" matching nn.Parameter(torch.randn(1)) shapes.
    weights = jax.random.normal(kw, (1,), dtype=jnp.float32)
    bias = jax.random.normal(kb, (1,), dtype=jnp.float32)

    def reference(x):
        return weights[0] * x + bias[0]

    # 1) Tiny input: single-block fast path (wrapper views it as (1, 1024)).
    x_small = jax.random.normal(kx, (8, 128), dtype=jnp.float32)
    y_small = jax.block_until_ready(linear_regression_forward(x_small, weights, bias))
    assert jnp.allclose(y_small, reference(x_small), atol=1e-6, rtol=1e-6), "mismatch (small)"

    # 2) Larger input: lane-dense reshape to (160, 8192) and a 2-step grid with
    #    a divisor row tile (tm=80), exercising the tiled pipeline path.
    x_big = jax.random.normal(kx, (2048, 640), dtype=jnp.float32)
    y_big = jax.block_until_ready(linear_regression_forward(x_big, weights, bias))
    assert jnp.allclose(y_big, reference(x_big), atol=1e-6, rtol=1e-6), "mismatch (tiled)"

    # 3) Awkward shape: no >=128 divisor, falls back to keeping the trailing dim.
    x_odd = jax.random.normal(kx, (7, 96), dtype=jnp.float32)
    y_odd = jax.block_until_ready(linear_regression_forward(x_odd, weights, bias))
    assert jnp.allclose(y_odd, reference(x_odd), atol=1e-6, rtol=1e-6), "mismatch (odd)"

    print("KERNEL_OK")
</pallas_src>

<mosaic_0001>
module attributes {stable_mosaic.version = 11 : i64} {
  func.func @kernel(%arg0: i32, %arg1: memref<1x1xf32, #tpu.memory_space<smem>>, %arg2: memref<1x1xf32, #tpu.memory_space<smem>>, %arg3: memref<1x1024xf32, #tpu.memory_space<vmem>>, %arg4: memref<1x1024xf32, #tpu.memory_space<vmem>>) attributes {dimension_semantics = [#tpu.dimension_semantics<core_parallel>], iteration_bounds = array<i64: 1>, scalar_prefetch = 0 : i64, scratch_operands = 0 : i64, tpu.core_type = #tpu.core_type<tc>, window_params = [{transform_indices = @transform_0, window_bounds = array<i64: 1, 1>}, {transform_indices = @transform_1, window_bounds = array<i64: 1, 1>}, {transform_indices = @transform_2, window_bounds = array<i64: 1, 1024>}, {transform_indices = @transform_3, window_bounds = array<i64: 1, 1024>}]} {
    %c0 = arith.constant 0 : index
    %c0_0 = arith.constant 0 : index
    %0 = memref.load %arg1[%c0, %c0_0] : memref<1x1xf32, #tpu.memory_space<smem>>
    %c0_1 = arith.constant 0 : index
    %c0_2 = arith.constant 0 : index
    %1 = memref.load %arg2[%c0_1, %c0_2] : memref<1x1xf32, #tpu.memory_space<smem>>
    %c0_3 = arith.constant 0 : index
    %c0_4 = arith.constant 0 : index
    %2 = vector.load %arg3[%c0_3, %c0_4] : memref<1x1024xf32, #tpu.memory_space<vmem>>, vector<1x1024xf32>
    %3 = vector.broadcast %0 : f32 to vector<1x1024xf32>
    %4 = arith.mulf %2, %3 : vector<1x1024xf32>
    %5 = vector.broadcast %1 : f32 to vector<1x1024xf32>
    %6 = arith.addf %4, %5 : vector<1x1024xf32>
    %c0_5 = arith.constant 0 : index
    %c0_6 = arith.constant 0 : index
    %7 = vector.load %arg4[%c0_5, %c0_6] : memref<1x1024xf32, #tpu.memory_space<vmem>>, vector<1x1024xf32>
    tpu.vector_store %arg4[%c0_5, %c0_6], %6 {strides = array<i32>} : memref<1x1024xf32, #tpu.memory_space<vmem>>, vector<1x1024xf32>,
    return
  }
  func.func @transform_0(%arg0: i32) -> (i32, i32) {
    %c0_i32 = arith.constant 0 : i32
    %c0_i32_0 = arith.constant 0 : i32
    %c0_i32_1 = arith.constant 0 : i32
    return %c0_i32, %c0_i32_0 : i32, i32
  }
  func.func @transform_1(%arg0: i32) -> (i32, i32) {
    %c0_i32 = arith.constant 0 : i32
    %c0_i32_0 = arith.constant 0 : i32
    %c0_i32_1 = arith.constant 0 : i32
    return %c0_i32, %c0_i32_0 : i32, i32
  }
  func.func @transform_2(%arg0: i32) -> (i32, i32) {
    %c0_i32 = arith.constant 0 : i32
    %c0_i32_0 = arith.constant 0 : i32
    return %arg0, %c0_i32 : i32, i32
  }
  func.func @transform_3(%arg0: i32) -> (i32, i32) {
    %c0_i32 = arith.constant 0 : i32
    %c0_i32_0 = arith.constant 0 : i32
    return %arg0, %c0_i32 : i32, i32
  }
}

module attributes {stable_mosaic.version = 11 : i64} {
  func.func @kernel(%arg0: i32, %arg1: memref<1x1xf32, #tpu.memory_space<smem>>, %arg2: memref<1x1xf32, #tpu.memory_space<smem>>, %arg3: memref<1x1024xf32, #tpu.memory_space<vmem>>, %arg4: memref<1x1024xf32, #tpu.memory_space<vmem>>) attributes {dimension_semantics = [#tpu.dimension_semantics<parallel>], iteration_bounds = array<i64: 1>, scalar_prefetch = 0 : i64, scratch_operands = 0 : i64, tpu.core_type = #tpu.core_type<tc>, window_params = [{transform_indices = @transform_0, window_bounds = array<i64: 1, 1>}, {transform_indices = @transform_1, window_bounds = array<i64: 1, 1>}, {transform_indices = @transform_2, window_bounds = array<i64: 1, 1024>}, {transform_indices = @transform_3, window_bounds = array<i64: 1, 1024>}]} {
    %c0 = arith.constant 0 : index
    %c0_0 = arith.constant 0 : index
    %0 = memref.load %arg1[%c0, %c0_0] : memref<1x1xf32, #tpu.memory_space<smem>>
    %c0_1 = arith.constant 0 : index
    %c0_2 = arith.constant 0 : index
    %1 = memref.load %arg2[%c0_1, %c0_2] : memref<1x1xf32, #tpu.memory_space<smem>>
    %c0_3 = arith.constant 0 : index
    %c0_4 = arith.constant 0 : index
    %2 = vector.load %arg3[%c0_3, %c0_4] : memref<1x1024xf32, #tpu.memory_space<vmem>>, vector<1x1024xf32>
    %3 = vector.broadcast %0 : f32 to vector<1x1024xf32>
    %4 = arith.mulf %2, %3 : vector<1x1024xf32>
    %5 = vector.broadcast %1 : f32 to vector<1x1024xf32>
    %6 = arith.addf %4, %5 : vector<1x1024xf32>
    %c0_5 = arith.constant 0 : index
    %c0_6 = arith.constant 0 : index
    %7 = vector.load %arg4[%c0_5, %c0_6] : memref<1x1024xf32, #tpu.memory_space<vmem>>, vector<1x1024xf32>
    tpu.vector_store %arg4[%c0_5, %c0_6], %6 {strides = array<i32>} : memref<1x1024xf32, #tpu.memory_space<vmem>>, vector<1x1024xf32>,
    return
  }
  func.func @transform_0(%arg0: i32) -> (i32, i32) {
    %c0_i32 = arith.constant 0 : i32
    %c0_i32_0 = arith.constant 0 : i32
    %c0_i32_1 = arith.constant 0 : i32
    return %c0_i32, %c0_i32_0 : i32, i32
  }
  func.func @transform_1(%arg0: i32) -> (i32, i32) {
    %c0_i32 = arith.constant 0 : i32
    %c0_i32_0 = arith.constant 0 : i32
    %c0_i32_1 = arith.constant 0 : i32
    return %c0_i32, %c0_i32_0 : i32, i32
  }
  func.func @transform_2(%arg0: i32) -> (i32, i32) {
    %c0_i32 = arith.constant 0 : i32
    %c0_i32_0 = arith.constant 0 : i32
    return %arg0, %c0_i32 : i32, i32
  }
  func.func @transform_3(%arg0: i32) -> (i32, i32) {
    %c0_i32 = arith.constant 0 : i32
    %c0_i32_0 = arith.constant 0 : i32
    return %arg0, %c0_i32 : i32, i32
  }
}

</mosaic_0001>

<bundles_post_ra>
// kernel: tpu_custom_call.1
= control target key start
LH: loop header
LB: loop body
LE: loop exit
PB: predicated region body
PF: predicated region fallthrough
CT: control target
= control target key end

     0   :  { %s144_s12 = sld [smem:[#allocation0]]   ;;  %s175_s0 = inlined_call_operand.<no memory space> [shape: f32[1,1], index: 0, kind: input, shape index: {}]   ;;  %s176_s1 = inlined_call_operand.<no memory space> [shape: f32[1,1], index: 1, kind: input, shape index: {}]   ;;  %s177_s2 = inlined_call_operand.hbm [shape: f32[1,1024], index: 2, kind: input, shape index: {}]   ;;  %s178_s3 = inlined_call_operand.hbm [shape: f32[1,1024], index: 3, kind: output, shape index: {}]  }
   0x1   :  { %10 = vsyncpa [#allocation5], 0 }
   0x2   :  { %11 = vsyncpa [#allocation6], 0  ;;  %s122_s17 = smov [#allocation4]   ;;  %s72_s22 = scalar_lea.hbm %s177_s2, 128 }
   0x3   :  { %s25_s18 = sshll.u32 %s122_s17, 4  ;;  %s26_s18 = int_to_ptr.vmem [resolvable:$true] %s25_s18 }
   0x6   :  { %s66_s13 = sshll.u32 %s144_s12, 7 }
   0x7   :  { %s23_s16 = scalar_lea.hbm %s177_s2, %s66_s13 }
   0x8   :  { %s70_s19 = scalar_lea.hbm %s23_s16, 128  ;;  %p73_p1 = scmp.lt.u32.totalorder %s23_s16, %s177_s2 }
   0x9   :  { %p71_p0 = scmp.ne.s32.totalorder %s23_s16, %s70_s19  ;;  %p74_p2 = scmp.lt.u32.totalorder %s72_s22, %s70_s19 }
   0xa   :  { %p76_p4 = scmp.lt.u32.totalorder %s70_s19, %s23_s16 }
   0xb   :  { %p75_p3 = por %p74_p2, %p73_p1 }
   0xd   :  { %p77_p5 = por %p76_p4, %p75_p3 }
   0xf   :  { %p78_p6 = pnand %p77_p5, %p71_p0 }
  0x11   :  { %81 = shalt.err (!%p78_p6)
}
  0x12   :  { %s82_s25 = scalar_lea.vmem %s26_s18, 128  ;;  %p87_p8 = scmp.lt.s32.totalorder %s26_s18, %s26_s18 }
  0x13   :  { %p83_p7 = scmp.ne.s32.totalorder %s26_s18, %s82_s25  ;;  %p88_p9 = scmp.lt.s32.totalorder %s82_s25, %s82_s25 }
  0x15   :  { %p89_p10 = por %p88_p9, %p87_p8 }
  0x17   :  { %p90_p11 = pnand %p89_p10, %p83_p7 }
  0x19   :  { %93 = shalt.err (!%p90_p11)
}
  0x1a   :  { %28 = dma.hbm_to_vmem [thread:$0]  %s23_s16, 128, %s26_s18, [#allocation5]  }
  0x1b   :  { %118 = dma.done.wait [#allocation5], 128  }
  0x1c   :  { %119 = vsyncadd [#allocation5], 4294967168  ;;  %v35_v0 = vstv %s175_s0  ;;  %v34_v1 = vld [vmem:[#allocation4] sm:$0xff]  ;;  %v37_v2 = vstv %s176_s1  ;;  %s123_s29 = smov [#allocation7]   ;;  %s47_s6 = scalar_lea.hbm %s178_s3, %s66_s13 }
  0x1d   :  { %s49_s30 = sshll.u32 %s123_s29, 4  ;;  %v36_v3 = vmul.f32 %v35_v0, %v34_v1  ;;  %s50_s30 = int_to_ptr.vmem [resolvable:$true] %s49_s30 }
  0x1e   :  { %s94_s7 = scalar_lea.vmem %s50_s30, 128  ;;  %p99_p13 = scmp.lt.s32.totalorder %s50_s30, %s50_s30 }
  0x1f   :  { %v38_v4 = vadd.f32 %v37_v2, %v36_v3  ;;  %p95_p12 = scmp.ne.s32.totalorder %s50_s30, %s94_s7  ;;  %p100_p0 = scmp.lt.s32.totalorder %s94_s7, %s94_s7 }
  0x21   :  { %39 = vst [vmem:[#allocation7] sm:$0xff] %v38_v4  ;;  %p101_p1 = por %p100_p0, %p99_p13 }
  0x23   :  { %p102_p2 = pnand %p101_p1, %p95_p12 }
  0x25   :  { %105 = shalt.err (!%p102_p2)
}
  0x26   :  { %s106_s0 = scalar_lea.hbm %s47_s6, 128  ;;  %s108_s9 = scalar_lea.hbm %s178_s3, 128 }
  0x27   :  { %p107_p3 = scmp.ne.s32.totalorder %s47_s6, %s106_s0  ;;  %p109_p4 = scmp.lt.u32.totalorder %s47_s6, %s178_s3 }
  0x28   :  { %p110_p5 = scmp.lt.u32.totalorder %s108_s9, %s106_s0  ;;  %p112_p7 = scmp.lt.u32.totalorder %s106_s0, %s47_s6 }
  0x2a   :  { %p111_p6 = por %p110_p5, %p109_p4 }
  0x2c   :  { %p113_p8 = por %p112_p7, %p111_p6 }
  0x2e   :  { %p114_p9 = pnand %p113_p8, %p107_p3 }
  0x30   :  { %117 = shalt.err (!%p114_p9)
}
  0x31   :  { %52 = dma.vmem_to_hbm [thread:$0]  %s50_s30, 128, %s47_s6, [#allocation6]  }
  0x32   :  { %120 = dma.done.wait [#allocation6], 128  }
  0x33   :  { %121 = vsyncadd [#allocation6], 4294967168 }
  0x34   :  { %56 = vsyncpa [#allocation5], 1 }
  0x35   :  { %57 = vsyncpa [#allocation6], 1 }

// kernel: tpu_custom_call.1
= control target key start
LH: loop header
LB: loop body
LE: loop exit
PB: predicated region body
PF: predicated region fallthrough
CT: control target
= control target key end

     0   :  { %10 = vsyncpa [#allocation5], 0  ;;  %s154_s0 = inlined_call_operand.<no memory space> [shape: f32[1,1], index: 0, kind: input, shape index: {}]   ;;  %s155_s1 = inlined_call_operand.<no memory space> [shape: f32[1,1], index: 1, kind: input, shape index: {}]   ;;  %s156_s2 = inlined_call_operand.hbm [shape: f32[1,1024], index: 2, kind: input, shape index: {}]   ;;  %s157_s3 = inlined_call_operand.hbm [shape: f32[1,1024], index: 3, kind: output, shape index: {}]  }
   0x1   :  { %11 = vsyncpa [#allocation6], 0  ;;  %s102_s12 = smov [#allocation4]   ;;  %s54_s16 = scalar_lea.hbm %s156_s2, 128 }
   0x2   :  { %s22_s13 = sshll.u32 %s102_s12, 4  ;;  %p55_p0 = scmp.ne.s32.totalorder %s156_s2, %s54_s16  ;;  %s23_s13 = int_to_ptr.vmem [resolvable:$true] %s22_s13 }
   0x3   :  { %p58_p1 = scmp.lt.u32.totalorder %s54_s16, %s156_s2 }
   0x5   :  { %p60_p2 = pnand %p58_p1, %p55_p0 }
   0x7   :  { %63 = shalt.err (!%p60_p2)
}
   0x8   :  { %s64_s21 = scalar_lea.vmem %s23_s13, 128  ;;  %p69_p4 = scmp.lt.s32.totalorder %s23_s13, %s23_s13 }
   0x9   :  { %p65_p3 = scmp.ne.s32.totalorder %s23_s13, %s64_s21  ;;  %p70_p5 = scmp.lt.s32.totalorder %s64_s21, %s64_s21 }
   0xb   :  { %p71_p6 = por %p70_p5, %p69_p4 }
   0xd   :  { %p72_p7 = pnand %p71_p6, %p65_p3 }
   0xf   :  { %75 = shalt.err (!%p72_p7)
}
  0x10   :  { %25 = dma.hbm_to_vmem [thread:$0]  %s156_s2, 128, %s23_s13, [#allocation5]  }
  0x11   :  { %98 = dma.done.wait [#allocation5], 128  }
  0x12   :  { %99 = vsyncadd [#allocation5], 4294967168  ;;  %v32_v0 = vstv %s154_s0  ;;  %v31_v1 = vld [vmem:[#allocation4] sm:$0xff]  ;;  %v34_v2 = vstv %s155_s1  ;;  %s103_s28 = smov [#allocation7]  }
  0x13   :  { %s43_s29 = sshll.u32 %s103_s28, 4  ;;  %v33_v3 = vmul.f32 %v32_v0, %v31_v1  ;;  %s44_s29 = int_to_ptr.vmem [resolvable:$true] %s43_s29 }
  0x14   :  { %s76_s30 = scalar_lea.vmem %s44_s29, 128  ;;  %p81_p9 = scmp.lt.s32.totalorder %s44_s29, %s44_s29 }
  0x15   :  { %v35_v4 = vadd.f32 %v34_v2, %v33_v3  ;;  %p77_p8 = scmp.ne.s32.totalorder %s44_s29, %s76_s30  ;;  %p82_p10 = scmp.lt.s32.totalorder %s76_s30, %s76_s30 }
  0x17   :  { %36 = vst [vmem:[#allocation7] sm:$0xff] %v35_v4  ;;  %p83_p11 = por %p82_p10, %p81_p9 }
  0x19   :  { %p84_p12 = pnand %p83_p11, %p77_p8 }
  0x1b   :  { %87 = shalt.err (!%p84_p12)
}
  0x1c   :  { %s88_s4 = scalar_lea.hbm %s157_s3, 128 }
  0x1d   :  { %p89_p13 = scmp.ne.s32.totalorder %s157_s3, %s88_s4  ;;  %p92_p0 = scmp.lt.u32.totalorder %s88_s4, %s157_s3 }
  0x1f   :  { %p94_p1 = pnand %p92_p0, %p89_p13 }
  0x21   :  { %97 = shalt.err (!%p94_p1)
}
  0x22   :  { %46 = dma.vmem_to_hbm [thread:$0]  %s44_s29, 128, %s157_s3, [#allocation6]  }
  0x23   :  { %100 = dma.done.wait [#allocation6], 128  }
  0x24   :  { %101 = vsyncadd [#allocation6], 4294967168 }
  0x25   :  { %50 = vsyncpa [#allocation5], 1 }
  0x26   :  { %51 = vsyncpa [#allocation6], 1 }

</bundles_post_ra>
